<compile_context>
chip_gen: v5e
topology: v5e:2x2
jax: 0.10.0
libtpu: 0.0.40
codegen_flags: <defaults>
</compile_context>

<pallas_src>
import jax
import jax.numpy as jnp
from jax.experimental import pallas as pl
from jax.experimental.pallas import tpu as pltpu

BN_EPS = 1e-5
LANE = 128


def _round_up(n, m):
    return ((n + m - 1) // m) * m


# ---------------------------------------------------------------------------
# Pass 1: BatchNorm1d batch statistics (training mode, biased variance).
# (B, input_dim) is tiny and fully VMEM-resident; gamma=1 / beta=0 so the
# affine part is a no-op.  Stats stay in f32.
# ---------------------------------------------------------------------------
def bn_stats_kernel(x_ref, mean_ref, istd_ref):
    x = x_ref[...].astype(jnp.float32)
    mean = jnp.mean(x, axis=0, keepdims=True)
    var = jnp.mean((x - mean) * (x - mean), axis=0, keepdims=True)
    mean_ref[...] = mean
    istd_ref[...] = jax.lax.rsqrt(var + BN_EPS)


def bn_stats(x):
    B, F = x.shape
    return pl.pallas_call(
        bn_stats_kernel,
        grid=(1,),
        in_specs=[pl.BlockSpec((B, F), lambda i: (0, 0))],
        out_specs=(pl.BlockSpec((1, F), lambda i: (0, 0)),
                   pl.BlockSpec((1, F), lambda i: (0, 0))),
        out_shape=(jax.ShapeDtypeStruct((1, F), jnp.float32),
                   jax.ShapeDtypeStruct((1, F), jnp.float32)),
    )(x)


# ---------------------------------------------------------------------------
# Pass 2: batch-tiled BN-normalize + matmul chain.
# Weights arrive pre-cast to bf16 (MXU-native); normalize / bias adds / relu
# stay in f32; matmuls accumulate in f32 on the MXU.
# ---------------------------------------------------------------------------
def mlp_matmul_kernel(x_ref, mean_ref, istd_ref,
                      w1_ref, b1_ref, w2_ref, b2_ref, w3_ref, b3_ref,
                      o_ref):
    xn = (x_ref[...] - mean_ref[...]) * istd_ref[...]           # f32 (TB, F)
    h1 = jnp.dot(xn.astype(jnp.bfloat16), w1_ref[...],
                 preferred_element_type=jnp.float32)
    h1 = jnp.maximum(h1 + b1_ref[...], 0.0)                     # f32 elementwise
    h2 = jnp.dot(h1.astype(jnp.bfloat16), w2_ref[...],
                 preferred_element_type=jnp.float32)
    h2 = jnp.maximum(h2 + b2_ref[...], 0.0)
    out = jnp.dot(h2.astype(jnp.bfloat16), w3_ref[...],
                  preferred_element_type=jnp.float32)
    o_ref[...] = (out + b3_ref[...]).astype(o_ref.dtype)        # lane-dense store


def mlp_forward(x, packed, *, tile_b=256):
    """x: (B, input_dim) float32.  packed: output of pack_params()."""
    B, F = x.shape
    out_dim = packed["out_dim"]
    Hp = packed["w2"].shape[0]
    Op = packed["w3"].shape[1]

    # -- full-batch BN stats (must NOT be computed per batch-tile) --
    mean, istd = bn_stats(x)

    # -- batch tiling; padded rows are sliced off at the end --
    tb = tile_b if B >= tile_b else _round_up(B, 8)
    Bp = _round_up(B, tb)
    if Bp != B:
        x = jnp.pad(x, ((0, Bp - B), (0, 0)))
    nb = Bp // tb

    flops = 2 * Bp * (F * Hp + Hp * Hp + Hp * Op)
    bytes_accessed = 4 * (Bp * F + Bp * Op) + 2 * (F * Hp + Hp * Hp + Hp * Op)

    out_p = pl.pallas_call(
        mlp_matmul_kernel,
        grid=(nb,),
        in_specs=[
            pl.BlockSpec((tb, F), lambda i: (i, 0)),    # x: new tile per step
            pl.BlockSpec((1, F), lambda i: (0, 0)),     # mean: VMEM-resident
            pl.BlockSpec((1, F), lambda i: (0, 0)),     # istd: VMEM-resident
            pl.BlockSpec((F, Hp), lambda i: (0, 0)),    # weights stay resident
            pl.BlockSpec((1, Hp), lambda i: (0, 0)),
            pl.BlockSpec((Hp, Hp), lambda i: (0, 0)),
            pl.BlockSpec((1, Hp), lambda i: (0, 0)),
            pl.BlockSpec((Hp, Op), lambda i: (0, 0)),
            pl.BlockSpec((1, Op), lambda i: (0, 0)),
        ],
        out_specs=pl.BlockSpec((tb, Op), lambda i: (i, 0)),
        out_shape=jax.ShapeDtypeStruct((Bp, Op), jnp.float32),
        compiler_params=pltpu.CompilerParams(
            dimension_semantics=("parallel",)),
        cost_estimate=pl.CostEstimate(flops=flops, transcendentals=0,
                                      bytes_accessed=bytes_accessed),
    )(x, mean, istd,
      packed["w1"], packed["b1"], packed["w2"], packed["b2"],
      packed["w3"], packed["b3"])

    # strip batch padding and lane padding
    return out_p[:B, :out_dim]


def init_params(key, input_dim, out_dim, hidden_dim=64):
    """nn.Linear default init U(-1/sqrt(fan_in), 1/sqrt(fan_in)); weights stored
    as (in_features, out_features)."""
    ks = jax.random.split(key, 6)

    def lin(kw, kb, fan_in, fan_out):
        bound = 1.0 / jnp.sqrt(fan_in)
        w = jax.random.uniform(kw, (fan_in, fan_out), jnp.float32, -bound, bound)
        b = jax.random.uniform(kb, (1, fan_out), jnp.float32, -bound, bound)
        return w, b

    w1, b1 = lin(ks[0], ks[1], input_dim, hidden_dim)
    w2, b2 = lin(ks[2], ks[3], hidden_dim, hidden_dim)
    w3, b3 = lin(ks[4], ks[5], hidden_dim, out_dim)
    return {"w1": w1, "b1": b1, "w2": w2, "b2": b2, "w3": w3, "b3": b3}


def pack_params(params, lane=LANE):
    """Zero-pad hidden/output dims to the 128-lane width (exact: padded hidden
    units get weight 0 and bias 0 -> relu(0)=0 contributes nothing; padded
    output columns are sliced off) and pre-cast all weights to bf16 once."""
    F, H = params["w1"].shape
    O = params["w3"].shape[1]
    Hp = _round_up(H, lane)
    Op = _round_up(O, lane)
    ph, po = Hp - H, Op - O
    return {
        "w1": jnp.pad(params["w1"], ((0, 0), (0, ph))).astype(jnp.bfloat16),
        "b1": jnp.pad(params["b1"], ((0, 0), (0, ph))),
        "w2": jnp.pad(params["w2"], ((0, ph), (0, ph))).astype(jnp.bfloat16),
        "b2": jnp.pad(params["b2"], ((0, 0), (0, ph))),
        "w3": jnp.pad(params["w3"], ((0, ph), (0, po))).astype(jnp.bfloat16),
        "b3": jnp.pad(params["b3"], ((0, 0), (0, po))),
        "out_dim": O,
    }


def mlp_reference(x, params):
    """Pure-JAX f32 reference (module semantics)."""
    mean = jnp.mean(x, axis=0, keepdims=True)
    var = jnp.mean((x - mean) ** 2, axis=0, keepdims=True)
    xn = (x - mean) / jnp.sqrt(var + BN_EPS)
    h1 = jnp.maximum(xn @ params["w1"] + params["b1"], 0.0)
    h2 = jnp.maximum(h1 @ params["w2"] + params["b2"], 0.0)
    return h2 @ params["w3"] + params["b3"]


if __name__ == "__main__":
    key = jax.random.PRNGKey(0)
    k_x, k_p = jax.random.split(key)

    # Small shapes consistent with the module; batch is deliberately not a
    # tile multiple so the pad/slice path and a 2-step "parallel" grid are
    # both exercised.
    batch, input_dim, hidden_dim, out_dim = 200, 16, 64, 4
    x = jax.random.normal(k_x, (batch, input_dim), jnp.float32)
    params = init_params(k_p, input_dim, out_dim, hidden_dim)
    packed = pack_params(params)

    out = mlp_forward(x, packed, tile_b=128)
    jax.block_until_ready(out)

    ref = mlp_reference(x, params)
    assert out.shape == (batch, out_dim), out.shape
    # Kernel uses bf16 matmul operands (f32 accumulation) -> bf16 tolerance.
    max_err = float(jnp.max(jnp.abs(out - ref)))
    assert jnp.allclose(out, ref, atol=2e-2, rtol=2e-2), f"max_err={max_err}"

    print("KERNEL_OK")
</pallas_src>

<mosaic_0001>
module attributes {stable_mosaic.version = 11 : i64} {
  func.func @bn_stats_kernel(%arg0: i32, %arg1: memref<200x16xf32, #tpu.memory_space<vmem>>, %arg2: memref<1x16xf32, #tpu.memory_space<vmem>>, %arg3: memref<1x16xf32, #tpu.memory_space<vmem>>) attributes {dimension_semantics = [#tpu.dimension_semantics<arbitrary>], iteration_bounds = array<i64: 1>, scalar_prefetch = 0 : i64, scratch_operands = 0 : i64, tpu.core_type = #tpu.core_type<tc>, window_params = [{pipeline_mode = #tpu.pipeline_mode<synchronous>, transform_indices = @transform_0, window_bounds = array<i64: 200, 16>}, {pipeline_mode = #tpu.pipeline_mode<synchronous>, transform_indices = @transform_1, window_bounds = array<i64: 1, 16>}, {pipeline_mode = #tpu.pipeline_mode<synchronous>, transform_indices = @transform_2, window_bounds = array<i64: 1, 16>}]} {
    %c0 = arith.constant 0 : index
    %c0_0 = arith.constant 0 : index
    %0 = vector.load %arg1[%c0, %c0_0] : memref<200x16xf32, #tpu.memory_space<vmem>>, vector<200x16xf32>
    %cst = arith.constant dense<0.000000e+00> : vector<16xf32>
    %1 = vector.multi_reduction <add>, %0, %cst [0] : vector<200x16xf32> to vector<16xf32>
    %2 = vector.shape_cast %1 : vector<16xf32> to vector<1x16xf32>
    %cst_1 = arith.constant 2.000000e+02 : f32
    %3 = vector.broadcast %cst_1 : f32 to vector<1x16xf32>
    %4 = arith.divf %2, %3 : vector<1x16xf32>
    %5 = vector.broadcast %4 : vector<1x16xf32> to vector<200x16xf32>
    %6 = arith.subf %0, %5 : vector<200x16xf32>
    %7 = vector.broadcast %4 : vector<1x16xf32> to vector<200x16xf32>
    %8 = arith.subf %0, %7 : vector<200x16xf32>
    %9 = arith.mulf %6, %8 : vector<200x16xf32>
    %cst_2 = arith.constant dense<0.000000e+00> : vector<16xf32>
    %10 = vector.multi_reduction <add>, %9, %cst_2 [0] : vector<200x16xf32> to vector<16xf32>
    %11 = vector.shape_cast %10 : vector<16xf32> to vector<1x16xf32>
    %cst_3 = arith.constant 2.000000e+02 : f32
    %12 = vector.broadcast %cst_3 : f32 to vector<1x16xf32>
    %13 = arith.divf %11, %12 : vector<1x16xf32>
    %c0_4 = arith.constant 0 : index
    %c0_5 = arith.constant 0 : index
    %14 = vector.load %arg2[%c0_4, %c0_5] : memref<1x16xf32, #tpu.memory_space<vmem>>, vector<1x16xf32>
    tpu.vector_store %arg2[%c0_4, %c0_5], %4 {strides = array<i32>} : memref<1x16xf32, #tpu.memory_space<vmem>>, vector<1x16xf32>,
    %cst_6 = arith.constant 9.99999974E-6 : f32
    %15 = vector.broadcast %cst_6 : f32 to vector<1x16xf32>
    %16 = arith.addf %13, %15 : vector<1x16xf32>
    %17 = math.rsqrt %16 : vector<1x16xf32>
    %c0_7 = arith.constant 0 : index
    %c0_8 = arith.constant 0 : index
    %18 = vector.load %arg3[%c0_7, %c0_8] : memref<1x16xf32, #tpu.memory_space<vmem>>, vector<1x16xf32>
    tpu.vector_store %arg3[%c0_7, %c0_8], %17 {strides = array<i32>} : memref<1x16xf32, #tpu.memory_space<vmem>>, vector<1x16xf32>,
    return
  }
  func.func @transform_0(%arg0: i32) -> (i32, i32) {
    %c0_i32 = arith.constant 0 : i32
    %c0_i32_0 = arith.constant 0 : i32
    %c0_i32_1 = arith.constant 0 : i32
    return %c0_i32, %c0_i32_0 : i32, i32
  }
  func.func @transform_1(%arg0: i32) -> (i32, i32) {
    %c0_i32 = arith.constant 0 : i32
    %c0_i32_0 = arith.constant 0 : i32
    %c0_i32_1 = arith.constant 0 : i32
    return %c0_i32, %c0_i32_0 : i32, i32
  }
  func.func @transform_2(%arg0: i32) -> (i32, i32) {
    %c0_i32 = arith.constant 0 : i32
    %c0_i32_0 = arith.constant 0 : i32
    %c0_i32_1 = arith.constant 0 : i32
    return %c0_i32, %c0_i32_0 : i32, i32
  }
}

</mosaic_0001>

<bundles_post_ra>
// kernel: tpu_custom_call.1
= control target key start
LH: loop header
LB: loop body
LE: loop exit
PB: predicated region body
PF: predicated region fallthrough
CT: control target
= control target key end

     0   :  { %8 = vsyncpa [#allocation3], 0  ;;  %vm37_vm0 = vcmask 130048   ;;  %s595_s0 = inlined_call_operand.vmem [shape: f32[200,16], index: 0, kind: input, shape index: {}]   ;;  %s596_s1 = inlined_call_operand.hbm [shape: f32[1,16], index: 1, kind: output, shape index: {0}]   ;;  %s597_s2 = inlined_call_operand.hbm [shape: f32[1,16], index: 2, kind: output, shape index: {1}]  }
   0x1   :  { %v333_v0 = vld [vmem:[%s595_s0] sm:$0xff]  ;;  %v338_v1 = vld [vmem:[%s595_s0 + $0x8] sm:$0xff]  ;;  %v343_v2 = vld [vmem:[%s595_s0 + $0x10] sm:$0xff] }
   0x2   :  { %v348_v3 = vld [vmem:[%s595_s0 + $0x18] sm:$0xff]  ;;  %v38_v4 = vsel %vm37_vm0, %v333_v0, 0.0  ;;  %v39_v5 = vsel %vm37_vm0, %v338_v1, 0.0  ;;  %v41_v6 = vsel %vm37_vm0, %v343_v2, 0.0  ;;  %v359_v7 = vld [vmem:[%s595_s0 + $0x20] sm:$0xff]  ;;  %v366_v10 = vld [vmem:[%s595_s0 + $0x28] sm:$0xff] }
   0x3   :  { %v40_v8 = vadd.f32 %v39_v5, %v38_v4  ;;  %v43_v9 = vsel %vm37_vm0, %v348_v3, 0.0  ;;  %v45_v12 = vsel %vm37_vm0, %v359_v7, 0.0  ;;  %v373_v13 = vld [vmem:[%s595_s0 + $0x30] sm:$0xff]  ;;  %v47_v15 = vsel %vm37_vm0, %v366_v10, 0.0  ;;  %v380_v16 = vld [vmem:[%s595_s0 + $0x38] sm:$0xff] }
   0x5   :  { %v42_v11 = vadd.f32 %v41_v6, %v40_v8 }
   0x7   :  { %v44_v14 = vadd.f32 %v43_v9, %v42_v11 }
   0x9   :  { %v46_v17 = vadd.f32 %v45_v12, %v44_v14 }
   0xa   :  { %9 = vsyncpa [#allocation5], 0  ;;  %v49_v18 = vsel %vm37_vm0, %v373_v13, 0.0  ;;  %v387_v19 = vld [vmem:[%s595_s0 + $0x40] sm:$0xff]  ;;  %v51_v21 = vsel %vm37_vm0, %v380_v16, 0.0  ;;  %v394_v22 = vld [vmem:[%s595_s0 + $0x48] sm:$0xff] }
   0xb   :  { %v48_v20 = vadd.f32 %v47_v15, %v46_v17  ;;  %v53_v24 = vsel %vm37_vm0, %v387_v19, 0.0  ;;  %v401_v25 = vld [vmem:[%s595_s0 + $0x50] sm:$0xff]  ;;  %v55_v27 = vsel %vm37_vm0, %v394_v22, 0.0  ;;  %v408_v28 = vld [vmem:[%s595_s0 + $0x58] sm:$0xff]  ;;  %v415_v31 = vld [vmem:[%s595_s0 + $0x60] sm:$0xff]  ;;  %v312_v57 = vmov 200.0  }
   0xc   :  { %v57_v30 = vsel %vm37_vm0, %v401_v25, 0.0  ;;  %v59_v33 = vsel %vm37_vm0, %v408_v28, 0.0  ;;  %v422_v34 = vld [vmem:[%s595_s0 + $0x68] sm:$0xff]  ;;  %v61_v36 = vsel %vm37_vm0, %v415_v31, 0.0  ;;  %v429_v37 = vld [vmem:[%s595_s0 + $0x70] sm:$0xff]  ;;  %v436_v40 = vld [vmem:[%s595_s0 + $0x78] sm:$0xff]  ;;  %256 = vrcp.f32 %v312_v57 }
   0xd   :  { %v50_v23 = vadd.f32 %v49_v18, %v48_v20  ;;  %v63_v39 = vsel %vm37_vm0, %v422_v34, 0.0  ;;  %v65_v42 = vsel %vm37_vm0, %v429_v37, 0.0  ;;  %v443_v43 = vld [vmem:[%s595_s0 + $0x80] sm:$0xff]  ;;  %v67_v45 = vsel %vm37_vm0, %v436_v40, 0.0  ;;  %v450_v46 = vld [vmem:[%s595_s0 + $0x88] sm:$0xff]  ;;  %v457_v49 = vld [vmem:[%s595_s0 + $0x90] sm:$0xff] }
   0xe   :  { %v69_v48 = vsel %vm37_vm0, %v443_v43, 0.0  ;;  %v71_v51 = vsel %vm37_vm0, %v450_v46, 0.0  ;;  %v464_v52 = vld [vmem:[%s595_s0 + $0x98] sm:$0xff]  ;;  %v73_v54 = vsel %vm37_vm0, %v457_v49, 0.0  ;;  %v471_v55 = vld [vmem:[%s595_s0 + $0xa0] sm:$0xff]  ;;  %v478_v59 = vld [vmem:[%s595_s0 + $0xa8] sm:$0xff] }
   0xf   :  { %v52_v26 = vadd.f32 %v51_v21, %v50_v23  ;;  %v75_v58 = vsel %vm37_vm0, %v464_v52, 0.0  ;;  %v77_v61 = vsel %vm37_vm0, %v471_v55, 0.0  ;;  %v485_v62 = vld [vmem:[%s595_s0 + $0xb0] sm:$0xff]  ;;  %v79_v4 = vsel %vm37_vm0, %v478_v59, 0.0  ;;  %v492_v6 = vld [vmem:[%s595_s0 + $0xb8] sm:$0xff]  ;;  %v499_v11 = vld [vmem:[%s595_s0 + $0xc0] sm:$0xff] }
  0x10   :  { %v81_v9 = vsel %vm37_vm0, %v485_v62, 0.0  ;;  %v83_v14 = vsel %vm37_vm0, %v492_v6, 0.0  ;;  %v85_v18 = vsel %vm37_vm0, %v499_v11, 0.0  ;;  %s313_s0 = smov [#allocation2]   ;;  %s228_s6 = sshll.u32 %s596_s1, 4  ;;  %vm207_vm2 = vcmask 122880   ;;  %s229_s6 = int_to_ptr.hbm [resolvable:$true] %s228_s6 }
  0x11   :  { %v54_v29 = vadd.f32 %v53_v24, %v52_v26  ;;  %s226_s3 = sshll.u32 %s313_s0, 4  ;;  %s314_s1 = smov [#allocation4]   ;;  %s227_s3 = int_to_ptr.vmem [resolvable:$true] %s226_s3 }
  0x12   :  { %v257_v5 = vpop.eup %256  ;;  %s237_s7 = sshll.u32 %s314_s1, 4  ;;  %s239_s10 = sshll.u32 %s597_s2, 4  ;;  %s238_s7 = int_to_ptr.vmem [resolvable:$true] %s237_s7  ;;  %s240_s10 = int_to_ptr.hbm [resolvable:$true] %s239_s10 }
  0x13   :  { %v56_v32 = vadd.f32 %v55_v27, %v54_v29  ;;  %v94_v15 = vmul.f32 200.0, %v257_v5  ;;  %vm98_vm1 = vweird.f32 %v257_v5 }
  0x15   :  { %v58_v35 = vadd.f32 %v57_v30, %v56_v32  ;;  %v95_v21 = vsub.f32 1.0, %v94_v15 }
  0x17   :  { %v60_v38 = vadd.f32 %v59_v33, %v58_v35  ;;  %v96_v26 = vmul.f32 %v257_v5, %v95_v21 }
  0x19   :  { %v62_v41 = vadd.f32 %v61_v36, %v60_v38  ;;  %v97_v30 = vadd.f32 %v257_v5, %v96_v26 }
  0x1b   :  { %v64_v44 = vadd.f32 %v63_v39, %v62_v41  ;;  %v505_v35 = vsel %vm98_vm1, %v257_v5, %v97_v30 }
  0x1d   :  { %v66_v47 = vadd.f32 %v65_v42, %v64_v44 }
  0x1f   :  { %v68_v50 = vadd.f32 %v67_v45, %v66_v47 }
  0x21   :  { %v70_v53 = vadd.f32 %v69_v48, %v68_v50 }
  0x23   :  { %v72_v56 = vadd.f32 %v71_v51, %v70_v53 }
  0x25   :  { %v74_v60 = vadd.f32 %v73_v54, %v72_v56 }
  0x27   :  { %v76_v63 = vadd.f32 %v75_v58, %v74_v60 }
  0x29   :  { %v78_v8 = vadd.f32 %v77_v61, %v76_v63 }
  0x2b   :  { %v80_v12 = vadd.f32 %v79_v4, %v78_v8 }
  0x2d   :  { %v82_v17 = vadd.f32 %v81_v9, %v80_v12 }
  0x2f   :  { %v84_v20 = vadd.f32 %v83_v14, %v82_v17 }
  0x31   :  { %v86_v23 = vadd.f32 %v85_v18, %v84_v20 }
  0x33   :  { %v87_v24 = vrot.slane %v86_v23, 4 }
  0x35   :  { %v88_v27 = vadd.f32 %v87_v24, %v86_v23 }
  0x37   :  { %v89_v29 = vrot.slane %v88_v27, 2 }
  0x39   :  { %v90_v32 = vadd.f32 %v89_v29, %v88_v27 }
  0x3b   :  { %v91_v33 = vrot.slane %v90_v32, 1 }
  0x3d   :  { %v92_v36 = vadd.f32 %v91_v33, %v90_v32 }
  0x3f   :  { %v511_v38 = vmul.f32 %v505_v35, %v92_v36 }
  0x41   :  { %208 = vst.msk [vmem:[#allocation2] sm:$0x1] %vm207_vm2, %v511_v38  ;;  %v101_v39 = vsub.f32 %v333_v0, %v511_v38  ;;  %v102_v41 = vsub.f32 %v338_v1, %v511_v38  ;;  %v103_v42 = vsub.f32 %v343_v2, %v511_v38  ;;  %v104_v44 = vsub.f32 %v348_v3, %v511_v38 }
  0x42   :  { %231 = dma.vmem_to_hbm [thread:$0]  %s227_s3, 16, %s229_s6, [#allocation3]   ;;  %v105_v45 = vsub.f32 %v359_v7, %v511_v38  ;;  %v106_v51 = vsub.f32 %v366_v10, %v511_v38  ;;  %v107_v0 = vsub.f32 %v373_v13, %v511_v38  ;;  %v108_v7 = vsub.f32 %v380_v16, %v511_v38 }
  0x43   :  { %v126_v47 = vmul.f32 %v101_v39, %v101_v39  ;;  %v127_v48 = vmul.f32 %v102_v41, %v102_v41  ;;  %v128_v50 = vmul.f32 %v103_v42, %v103_v42  ;;  %v129_v53 = vmul.f32 %v104_v44, %v104_v44 }
  0x44   :  { %v130_v1 = vmul.f32 %v105_v45, %v105_v45  ;;  %v131_v57 = vmul.f32 %v106_v51, %v106_v51  ;;  %v109_v10 = vsub.f32 %v387_v19, %v511_v38  ;;  %v132_v61 = vmul.f32 %v107_v0, %v107_v0 }
  0x45   :  { %v151_v54 = vsel %vm37_vm0, %v126_v47, 0.0  ;;  %v152_v2 = vsel %vm37_vm0, %v127_v48, 0.0  ;;  %v154_v3 = vsel %vm37_vm0, %v128_v50, 0.0  ;;  %v156_v58 = vsel %vm37_vm0, %v129_v53, 0.0 }
  0x46   :  { %v153_v56 = vadd.f32 %v152_v2, %v151_v54  ;;  %v158_v13 = vsel %vm37_vm0, %v130_v1, 0.0  ;;  %v110_v4 = vsub.f32 %v394_v22, %v511_v38  ;;  %v133_v5 = vmul.f32 %v108_v7, %v108_v7 }
  0x47   :  { %v160_v8 = vsel %vm37_vm0, %v131_v57, 0.0  ;;  %v111_v16 = vsub.f32 %v401_v25, %v511_v38  ;;  %v134_v12 = vmul.f32 %v109_v10, %v109_v10  ;;  %v162_v14 = vsel %vm37_vm0, %v132_v61, 0.0 }
  0x48   :  { %v155_v60 = vadd.f32 %v154_v3, %v153_v56  ;;  %v112_v19 = vsub.f32 %v408_v28, %v511_v38  ;;  %v135_v17 = vmul.f32 %v110_v4, %v110_v4  ;;  %v164_v18 = vsel %vm37_vm0, %v133_v5, 0.0 }
  0x49   :  { %v113_v22 = vsub.f32 %v415_v31, %v511_v38  ;;  %v136_v21 = vmul.f32 %v111_v16, %v111_v16  ;;  %v166_v23 = vsel %vm37_vm0, %v134_v12, 0.0  ;;  %v114_v25 = vsub.f32 %v422_v34, %v511_v38 }
  0x4a   :  { %v157_v63 = vadd.f32 %v156_v58, %v155_v60  ;;  %v137_v26 = vmul.f32 %v112_v19, %v112_v19  ;;  %v168_v27 = vsel %vm37_vm0, %v135_v17, 0.0  ;;  %v115_v28 = vsub.f32 %v429_v37, %v511_v38 }
  0x4b   :  { %v138_v30 = vmul.f32 %v113_v22, %v113_v22  ;;  %v170_v32 = vsel %vm37_vm0, %v136_v21, 0.0  ;;  %v116_v31 = vsub.f32 %v436_v40, %v511_v38  ;;  %v139_v36 = vmul.f32 %v114_v25, %v114_v25 }
  0x4c   :  { %v159_v9 = vadd.f32 %v158_v13, %v157_v63  ;;  %v172_v39 = vsel %vm37_vm0, %v137_v26, 0.0  ;;  %v117_v34 = vsub.f32 %v443_v43, %v511_v38  ;;  %v140_v42 = vmul.f32 %v115_v28, %v115_v28 }
  0x4d   :  { %v174_v44 = vsel %vm37_vm0, %v138_v30, 0.0  ;;  %v118_v37 = vsub.f32 %v450_v46, %v511_v38  ;;  %v141_v47 = vmul.f32 %v116_v31, %v116_v31  ;;  %v176_v48 = vsel %vm37_vm0, %v139_v36, 0.0 }
  0x4e   :  { %v161_v15 = vadd.f32 %v160_v8, %v159_v9  ;;  %v119_v40 = vsub.f32 %v457_v49, %v511_v38  ;;  %v142_v51 = vmul.f32 %v117_v34, %v117_v34  ;;  %v178_v53 = vsel %vm37_vm0, %v140_v42, 0.0 }
  0x4f   :  { %v120_v43 = vsub.f32 %v464_v52, %v511_v38  ;;  %v143_v1 = vmul.f32 %v118_v37, %v118_v37  ;;  %v180_v54 = vsel %vm37_vm0, %v141_v47, 0.0  ;;  %v121_v46 = vsub.f32 %v471_v55, %v511_v38 }
  0x50   :  { %v163_v20 = vadd.f32 %v162_v14, %v161_v15  ;;  %v144_v56 = vmul.f32 %v119_v40, %v119_v40  ;;  %v182_v3 = vsel %vm37_vm0, %v142_v51, 0.0  ;;  %v122_v49 = vsub.f32 %v478_v59, %v511_v38 }
  0x51   :  { %v145_v57 = vmul.f32 %v120_v43, %v120_v43  ;;  %v184_v58 = vsel %vm37_vm0, %v143_v1, 0.0  ;;  %v123_v52 = vsub.f32 %v485_v62, %v511_v38  ;;  %v146_v10 = vmul.f32 %v121_v46, %v121_v46 }
  0x52   :  { %v165_v24 = vadd.f32 %v164_v18, %v163_v20  ;;  %v186_v61 = vsel %vm37_vm0, %v144_v56, 0.0  ;;  %v124_v55 = vsub.f32 %v492_v6, %v511_v38  ;;  %v147_v63 = vmul.f32 %v122_v49, %v122_v49 }
  0x53   :  { %v188_v4 = vsel %vm37_vm0, %v145_v57, 0.0  ;;  %v125_v59 = vsub.f32 %v499_v11, %v511_v38  ;;  %v148_v8 = vmul.f32 %v123_v52, %v123_v52  ;;  %v190_v9 = vsel %vm37_vm0, %v146_v10, 0.0 }
  0x54   :  { %v167_v29 = vadd.f32 %v166_v23, %v165_v24  ;;  %v149_v12 = vmul.f32 %v124_v55, %v124_v55  ;;  %v192_v62 = vsel %vm37_vm0, %v147_v63, 0.0 }
  0x55   :  { %v150_v15 = vmul.f32 %v125_v59, %v125_v59  ;;  %v194_v19 = vsel %vm37_vm0, %v148_v8, 0.0 }
  0x56   :  { %v169_v33 = vadd.f32 %v168_v27, %v167_v29  ;;  %v196_v6 = vsel %vm37_vm0, %v149_v12, 0.0 }
  0x57   :  { %v198_v20 = vsel %vm37_vm0, %v150_v15, 0.0 }
  0x58   :  { %v171_v41 = vadd.f32 %v170_v32, %v169_v33 }
  0x5a   :  { %v173_v45 = vadd.f32 %v172_v39, %v171_v41 }
  0x5c   :  { %v175_v50 = vadd.f32 %v174_v44, %v173_v45 }
  0x5e   :  { %v177_v0 = vadd.f32 %v176_v48, %v175_v50 }
  0x60   :  { %v179_v2 = vadd.f32 %v178_v53, %v177_v0 }
  0x62   :  { %v181_v7 = vadd.f32 %v180_v54, %v179_v2 }
  0x64   :  { %v183_v60 = vadd.f32 %v182_v3, %v181_v7 }
  0x66   :  { %v185_v13 = vadd.f32 %v184_v58, %v183_v60 }
  0x68   :  { %v187_v5 = vadd.f32 %v186_v61, %v185_v13 }
  0x6a   :  { %v189_v16 = vadd.f32 %v188_v4, %v187_v5 }
  0x6c   :  { %v191_v14 = vadd.f32 %v190_v9, %v189_v16 }
  0x6e   :  { %v193_v17 = vadd.f32 %v192_v62, %v191_v14 }
  0x70   :  { %v195_v18 = vadd.f32 %v194_v19, %v193_v17 }
  0x72   :  { %v197_v22 = vadd.f32 %v196_v6, %v195_v18 }
  0x74   :  { %v199_v21 = vadd.f32 %v198_v20, %v197_v22 }
  0x76   :  { %v200_v11 = vrot.slane %v199_v21, 4 }
  0x78   :  { %v201_v38 = vadd.f32 %v200_v11, %v199_v21 }
  0x7a   :  { %v202_v23 = vrot.slane %v201_v38, 2 }
  0x7c   :  { %v203_v24 = vadd.f32 %v202_v23, %v201_v38 }
  0x7e   :  { %v204_v25 = vrot.slane %v203_v24, 1 }
  0x80   :  { %v205_v26 = vadd.f32 %v204_v25, %v203_v24 }
  0x82   :  { %v206_v27 = vmul.f32 %v205_v26, %v505_v35 }
  0x84   :  { %v209_v29 = vadd.f32 1e-05, %v206_v27 }
  0x86   :  { %258 = vrsqrt.f32 %v209_v29  ;;  %vm216_vm3 = vweird.f32 %v209_v29 }
  0x8c   :  { %v259_v28 = vpop.eup %258 }
  0x8d   :  { %v211_v30 = vmul.f32 %v259_v28, %v209_v29  ;;  %vm217_vm4 = vweird.f32 %v259_v28 }
  0x8e   :  { %vm218_vm5 = vmor %vm216_vm3, %vm217_vm4 }
  0x8f   :  { %v212_v32 = vmul.f32 %v259_v28, %v211_v30 }
  0x91   :  { %v213_v33 = vmul.f32 0.5, %v212_v32 }
  0x93   :  { %v214_v31 = vsub.f32 1.5, %v213_v33 }
  0x95   :  { %v215_v36 = vmul.f32 %v259_v28, %v214_v31 }
  0x97   :  { %v219_v35 = vsel %vm218_vm5, %v259_v28, %v215_v36 }
  0x98   :  { %220 = vst.msk [vmem:[#allocation4] sm:$0x1] %vm207_vm2, %v219_v35 }
  0x99   :  { %242 = dma.vmem_to_hbm [thread:$0]  %s238_s7, 16, %s240_s10, [#allocation5]  }
  0x9a   :  { %308 = dma.done.wait [#allocation3], 16  }
  0x9b   :  { %309 = vsyncadd [#allocation3], 4294967280 }
  0x9c   :  { %310 = dma.done.wait [#allocation5], 16  }
  0x9d   :  { %311 = vsyncadd [#allocation5], 4294967280 }
  0x9e   :  { %251 = vsyncpa [#allocation3], 1 }
  0x9f   :  { %252 = vsyncpa [#allocation5], 1 }

</bundles_post_ra>
